<compile_context>
chip_gen: v6e
topology: v6e:2x2x1
jax: 0.10.0
libtpu: 0.0.40
codegen_flags: <defaults>
</compile_context>

<pallas_src>
import jax
import jax.numpy as jnp
from jax.experimental import pallas as pl
from jax.experimental.pallas import tpu as pltpu

_LANE = 128
_SUBLANE = 8


def _round_down(x: int, m: int) -> int:
    return (x // m) * m


def _cdiv(a: int, b: int) -> int:
    return -(-a // b)


def _balance_grid(extent: int, tile: int, step: int, lower: int) -> int:
    """Shrink `tile` (in multiples of `step`, not below `lower` / tile//2) so the
    grid over `extent` has an even or >= 8 number of steps.  v7x shards a
    'parallel' grid axis across its 2 TensorCores; an odd 3/5/7-step grid leaves
    one core under-used on this purely bandwidth-bound kernel."""
    if tile >= extent:
        return tile
    n = _cdiv(extent, tile)
    if n % 2 == 0 or n >= 8:
        return tile
    floor = max(lower, tile // 2)
    t = tile - step
    while t >= floor:
        n = _cdiv(extent, t)
        if n % 2 == 0 or n >= 8:
            return t
        t -= step
    return tile


def _add_pos_kernel(feat_ref, pos_ref, out_ref):
    # feat_ref: (tb, tc) tile of the flattened features
    # pos_ref : (1,  tc) tile of the flattened positional table (broadcast over tb)
    # Add natively in the promoted output dtype: bf16+bf16 stays bf16 (v6e/v7x
    # have a bf16 VALU), mixed bf16+f32 promotes to f32 -- matches PyTorch.
    out_ref[...] = (feat_ref[...].astype(out_ref.dtype)
                    + pos_ref[...].astype(out_ref.dtype))


def positional_encoding_1d(
    feat: jax.Array,
    pos_emb_weight: jax.Array,
    *,
    min_pallas_bytes: int = 4 * 1024 * 1024,
    target_tile_bytes: int = 4 * 1024 * 1024,
    donate_feat: bool = False,
) -> jax.Array:
    """feat: (B, L, D); pos_emb_weight: (max_length, D). Returns feat + pos_emb[:L]."""
    B, L, D = feat.shape
    max_length, D2 = pos_emb_weight.shape
    assert D == D2 and L <= max_length

    out_dtype = jnp.promote_types(feat.dtype, pos_emb_weight.dtype)
    LD = L * D

    feat_isz = jnp.dtype(feat.dtype).itemsize
    pos_isz = jnp.dtype(pos_emb_weight.dtype).itemsize
    out_isz = jnp.dtype(out_dtype).itemsize
    max_isz = max(feat_isz, out_isz)

    traffic_bytes = B * LD * (feat_isz + out_isz) + LD * pos_isz

    # Tiny inputs: a fused XLA broadcast-add already runs at HBM roofline; the
    # Pallas custom-call launch (~1-2 us ~= several MB of traffic at v6e/v7x BW)
    # would dominate.  Also covers LD < 128 (no lane-aligned tiling possible).
    if traffic_bytes < min_pallas_bytes or LD < _LANE:
        return feat.astype(out_dtype) + pos_emb_weight[:L].astype(out_dtype)[None, :, :]

    # Lane-dense layout: flatten (L, D) -> trailing axis LD (contiguous => free).
    feat2d = feat.reshape(B, LD)

    # Dtype-aware row-tile granularity: sub-32-bit dtypes pack 2/4 rows per
    # sublane, so row tiles are multiples of 8 (f32) / 16 (bf16) / 32 (int8).
    pack = _SUBLANE * max(1, 4 // min(feat_isz, out_isz))
    min_tb = B if B <= pack else pack

    target_elems = max(_LANE, target_tile_bytes // max_isz)

    cost = pl.CostEstimate(flops=B * LD, transcendentals=0,
                           bytes_accessed=traffic_bytes)

    extra_kwargs = {}
    if donate_feat and out_dtype == feat.dtype:
        # The feat tile is read exactly once, then overwritten -> safe to alias.
        # NOTE: assumes num_scalar_prefetch stays 0 (feat is operand 0); only
        # avoids the HBM allocation if the caller actually donates feat.
        extra_kwargs["input_output_aliases"] = {0: 0}

    if min_tb * LD * max_isz <= 2 * target_tile_bytes:
        # ---------- Path A: full-row tiles (tc = LD), 1-D grid over batch. ----
        tb = target_elems // LD
        if tb >= B:
            tb = B
        else:
            tb = max(min_tb, _round_down(tb, pack))
            tb = min(tb, B)
        tb = _balance_grid(B, tb, pack, pack)
        tc = LD
        nb = _cdiv(B, tb)

        if LD % _LANE == 0 or L == max_length:
            # Whole table, flattened (no slice/copy): the first LD columns ARE
            # pos_emb[:L].ravel(); the constant-index (1, LD) block never
            # touches the rest.
            pos_arg = pos_emb_weight.reshape(1, max_length * D)
        else:
            # Block-shape legality needs the pos block's last dim to be a
            # multiple of 128 or the full array extent; slice to exactly L rows
            # (small contiguous XLA copy) so (1, LD) is the full extent.
            pos_arg = pos_emb_weight[:L].reshape(1, LD)

        grid = (nb,)
        in_specs = [
            pl.BlockSpec((tb, tc), lambda b: (b, 0)),   # feat tile (one contiguous DMA)
            pl.BlockSpec((1, tc), lambda b: (0, 0)),    # pos tile, grid-resident
        ]
        out_spec = pl.BlockSpec((tb, tc), lambda b: (b, 0))
        dim_sem = ("parallel",)
    else:
        # ---------- Path B: a minimal row-group exceeds the budget -> column tiling.
        tb = min_tb
        tc = min(_round_down(LD, _LANE),
                 max(_LANE, _round_down(target_elems // tb, _LANE)))
        tc = _balance_grid(LD, tc, _LANE, _LANE)
        nc = _cdiv(LD, tc)
        nb = _cdiv(B, tb)

        # Whole table, flattened.  The final partial column block reads pos
        # columns beyond L*D (i.e. pos rows >= L); this is harmless ONLY because
        # the matching output columns are masked.  Revisit if the out index_map,
        # grid order, or a revisit/accumulate pattern ever changes.
        pos_arg = pos_emb_weight.reshape(1, max_length * D)

        # Batch innermost so the pos tile (column-indexed only) is not re-DMA'd
        # across batch steps.
        grid = (nc, nb)
        in_specs = [
            pl.BlockSpec((tb, tc), lambda c, b: (b, c)),   # feat tile
            pl.BlockSpec((1, tc), lambda c, b: (0, c)),    # shared pos tile
        ]
        out_spec = pl.BlockSpec((tb, tc), lambda c, b: (b, c))
        dim_sem = ("parallel", "parallel")

    # VMEM budget from the actual double-buffered live set (+ slack) rather than
    # a blanket 32 MiB: respects v7x's 64 MiB physical VMEM and leaves scoped
    # VMEM for neighbouring fusions on v5e.
    live_bytes = 2 * (tb * tc * feat_isz + tb * tc * out_isz + tc * pos_isz)
    vmem_limit = max(4 * 1024 * 1024, live_bytes + 2 * 1024 * 1024)

    out2d = pl.pallas_call(
        _add_pos_kernel,
        out_shape=jax.ShapeDtypeStruct((B, LD), out_dtype),
        grid_spec=pltpu.PrefetchScalarGridSpec(
            num_scalar_prefetch=0,
            grid=grid,
            in_specs=in_specs,
            out_specs=out_spec,
        ),
        compiler_params=pltpu.CompilerParams(
            dimension_semantics=dim_sem,
            vmem_limit_bytes=vmem_limit,
        ),
        cost_estimate=cost,
        **extra_kwargs,
    )(feat2d, pos_arg)

    return out2d.reshape(B, L, D)


# TODO(synk): forward_with_position (single-position variant) is a trivial 1-row
# gather + add and is not translated here; only forward() is implemented.


if __name__ == "__main__":
    def _ref(feat, w, L):
        dt = jnp.promote_types(feat.dtype, w.dtype)
        return feat.astype(dt) + w[:L].astype(dt)[None, :, :]

    key = jax.random.PRNGKey(0)

    # --- Test 1: module-consistent small shape, forced through Path A (full-row tiles).
    max_length, D, B, L = 16, 32, 2, 8
    k1, k2, key = jax.random.split(key, 3)
    w = jax.random.normal(k1, (max_length, D), dtype=jnp.float32)
    feat = jax.random.normal(k2, (B, L, D), dtype=jnp.float32)
    ref = _ref(feat, w, L)
    out = jax.block_until_ready(positional_encoding_1d(feat, w, min_pallas_bytes=0))
    assert out.shape == (B, L, D) and out.dtype == ref.dtype
    assert jnp.allclose(out, ref, atol=1e-6), "mismatch (Path A, lane-aligned LD)"

    # --- Test 2: same shape via the default path (plain-JAX fallback below threshold).
    out2 = jax.block_until_ready(positional_encoding_1d(feat, w))
    assert jnp.allclose(out2, ref, atol=1e-6), "mismatch (fallback path)"

    # --- Test 3: LD not lane-aligned and L < max_length -> Path A with sliced pos table.
    max_length, D, B, L = 16, 24, 4, 10
    k1, k2, key = jax.random.split(key, 3)
    w = jax.random.normal(k1, (max_length, D), dtype=jnp.float32)
    feat = jax.random.normal(k2, (B, L, D), dtype=jnp.float32)
    out3 = jax.block_until_ready(positional_encoding_1d(feat, w, min_pallas_bytes=0))
    assert jnp.allclose(out3, _ref(feat, w, L), atol=1e-6), "mismatch (Path A, sliced pos)"

    # --- Test 4: tiny tile budget forces Path B (column tiling) incl. a masked
    #     partial final column block and the even-grid nudge; feat donated.
    max_length, D, B, L = 96, 288, 2, 65
    k1, k2, key = jax.random.split(key, 3)
    w = jax.random.normal(k1, (max_length, D), dtype=jnp.float32)
    feat = jax.random.normal(k2, (B, L, D), dtype=jnp.float32)
    out4 = jax.block_until_ready(
        positional_encoding_1d(feat, w, min_pallas_bytes=0,
                               target_tile_bytes=32 * 1024, donate_feat=True))
    assert jnp.allclose(out4, _ref(feat, w, L), atol=1e-6), "mismatch (Path B, column tiled)"

    # --- Test 5: bf16 feat + bf16 table -> native bf16 add in-kernel.
    max_length, D, B, L = 16, 64, 12, 8
    k1, k2, key = jax.random.split(key, 3)
    w = jax.random.normal(k1, (max_length, D), dtype=jnp.float32).astype(jnp.bfloat16)
    feat = jax.random.normal(k2, (B, L, D), dtype=jnp.float32).astype(jnp.bfloat16)
    out5 = jax.block_until_ready(positional_encoding_1d(feat, w, min_pallas_bytes=0))
    assert out5.dtype == jnp.bfloat16
    assert jnp.allclose(out5.astype(jnp.float32),
                        _ref(feat, w, L).astype(jnp.float32), atol=1e-2), "mismatch (bf16)"

    # --- Test 6: mixed bf16 feat + f32 table -> promoted f32 add (PyTorch promotion).
    max_length, D, B, L = 16, 64, 4, 8
    k1, k2, key = jax.random.split(key, 3)
    w = jax.random.normal(k1, (max_length, D), dtype=jnp.float32)
    feat = jax.random.normal(k2, (B, L, D), dtype=jnp.float32).astype(jnp.bfloat16)
    out6 = jax.block_until_ready(positional_encoding_1d(feat, w, min_pallas_bytes=0))
    assert out6.dtype == jnp.float32
    assert jnp.allclose(out6, _ref(feat, w, L), atol=1e-5), "mismatch (mixed dtype)"

    print("KERNEL_OK")
</pallas_src>

<mosaic_0001>
module attributes {stable_mosaic.version = 11 : i64} {
  func.func @_add_pos_kernel(%arg0: i32, %arg1: memref<2x256xf32, #tpu.memory_space<vmem>>, %arg2: memref<1x256xf32, #tpu.memory_space<vmem>>, %arg3: memref<2x256xf32, #tpu.memory_space<vmem>>) attributes {dimension_semantics = [#tpu.dimension_semantics<parallel>], iteration_bounds = array<i64: 1>, scalar_prefetch = 0 : i64, scratch_operands = 0 : i64, tpu.core_type = #tpu.core_type<tc>, window_params = [{transform_indices = @transform_0, window_bounds = array<i64: 2, 256>}, {transform_indices = @transform_1, window_bounds = array<i64: 1, 256>}, {transform_indices = @transform_2, window_bounds = array<i64: 2, 256>}]} {
    %c0 = arith.constant 0 : index
    %c0_0 = arith.constant 0 : index
    %0 = vector.load %arg1[%c0, %c0_0] : memref<2x256xf32, #tpu.memory_space<vmem>>, vector<2x256xf32>
    %c0_1 = arith.constant 0 : index
    %c0_2 = arith.constant 0 : index
    %1 = vector.load %arg2[%c0_1, %c0_2] : memref<1x256xf32, #tpu.memory_space<vmem>>, vector<1x256xf32>
    %2 = vector.broadcast %1 : vector<1x256xf32> to vector<2x256xf32>
    %3 = arith.addf %0, %2 : vector<2x256xf32>
    %c0_3 = arith.constant 0 : index
    %c0_4 = arith.constant 0 : index
    %4 = vector.load %arg3[%c0_3, %c0_4] : memref<2x256xf32, #tpu.memory_space<vmem>>, vector<2x256xf32>
    tpu.vector_store %arg3[%c0_3, %c0_4], %3 {strides = array<i32>} : memref<2x256xf32, #tpu.memory_space<vmem>>, vector<2x256xf32>,
    return
  }
  func.func @transform_0(%arg0: i32) -> (i32, i32) {
    %c0_i32 = arith.constant 0 : i32
    %c0_i32_0 = arith.constant 0 : i32
    return %arg0, %c0_i32 : i32, i32
  }
  func.func @transform_1(%arg0: i32) -> (i32, i32) {
    %c0_i32 = arith.constant 0 : i32
    %c0_i32_0 = arith.constant 0 : i32
    %c0_i32_1 = arith.constant 0 : i32
    return %c0_i32, %c0_i32_0 : i32, i32
  }
  func.func @transform_2(%arg0: i32) -> (i32, i32) {
    %c0_i32 = arith.constant 0 : i32
    %c0_i32_0 = arith.constant 0 : i32
    return %arg0, %c0_i32 : i32, i32
  }
}

</mosaic_0001>

<bundles_post_ra>
// kernel: tpu_custom_call.1
= control target key start
LH: loop header
LB: loop body
LE: loop exit
PB: predicated region body
PF: predicated region fallthrough
CT: control target
= control target key end

     0   :  { %7 = vsyncpa [#allocation3], 0  ;;  %s172_s0 = inlined_call_operand.hbm [shape: f32[2,256], index: 0, kind: input, shape index: {}]   ;;  %s173_s1 = inlined_call_operand.hbm [shape: f32[1,512], index: 1, kind: input, shape index: {}]   ;;  %s174_s2 = inlined_call_operand.hbm [shape: f32[2,256], index: 2, kind: output, shape index: {}]  }
   0x1   :  { %8 = vsyncpa [#allocation6], 0 }
   0x2   :  { %9 = vsyncpa [#allocation4], 0  ;;  %s144_s9 = smov [#allocation2]   ;;  %s145_s11 = smov [#allocation5]  }
   0x3   :  { %s16_s10 = sshll.u32 %s144_s9, 4  ;;  %s26_s12 = sshll.u32 %s145_s11, 4  ;;  %s17_s10 = int_to_ptr.vmem [resolvable:$true] %s16_s10  ;;  %s27_s12 = int_to_ptr.vmem [resolvable:$true] %s26_s12 }
   0x4   :  { %s86_s13 = scalar_lea.vmem %s17_s10, 64  ;;  %p91_p1 = scmp.lt.s32.totalorder %s17_s10, %s17_s10 }
   0x5   :  { %p87_p0 = scmp.ne.s32.totalorder %s17_s10, %s86_s13  ;;  %p92_p2 = scmp.lt.s32.totalorder %s86_s13, %s86_s13 }
   0x7   :  { %p93_p3 = por %p92_p2, %p91_p1 }
   0x9   :  { %p94_p4 = pnand %p93_p3, %p87_p0 }
   0xb   :  { %97 = shalt.err (!%p94_p4)
}
   0xc   :  { %19 = dma.hbm_to_vmem [thread:$0]  %s172_s0, 64, %s17_s10, [#allocation3]  }
   0xd   :  { %s106_s16 = scalar_lea.vmem %s27_s12, 32  ;;  %p111_p6 = scmp.lt.s32.totalorder %s27_s12, %s27_s12 }
   0xe   :  { %p107_p5 = scmp.ne.s32.totalorder %s27_s12, %s106_s16  ;;  %p112_p7 = scmp.lt.s32.totalorder %s106_s16, %s106_s16 }
  0x10   :  { %p113_p8 = por %p112_p7, %p111_p6 }
  0x12   :  { %p114_p9 = pnand %p113_p8, %p107_p5 }
  0x14   :  { %117 = shalt.err (!%p114_p9)
}
  0x15   :  { %29 = dma.hbm_to_vmem [thread:$0]  %s173_s1, 32, %s27_s12, [#allocation6]  }
  0x16   :  { %138 = dma.done.wait [#allocation3], 64  }
  0x17   :  { %139 = vsyncadd [#allocation3], 4294967232 }
  0x18   :  { %140 = dma.done.wait [#allocation6], 32  }
  0x19   :  { %141 = vsyncadd [#allocation6], 4294967264  ;;  %v39_v0 = vlaneseq  ;;  %v146_v1 = vmov 1983009808   ;;  %v37_v7 = vld [vmem:[#allocation5] sm:$0x3] }
  0x1a   :  { %v49_v2 = vunpack.c.l.s4 %v146_v1  ;;  %v36_v12 = vld [vmem:[#allocation2] sm:$0xf]  ;;  %s147_s0 = smov [#allocation7]  }
  0x1b   :  { %v40_v3 = vshrl.u32 %v39_v0, 7  ;;  %s64_s19 = sshll.u32 %s147_s0, 4  ;;  %s65_s19 = int_to_ptr.vmem [resolvable:$true] %s64_s19 }
  0x1c   :  { %v50_v6 = vunpack.c.0.s8 %v49_v2  ;;  %s118_s1 = scalar_lea.vmem %s65_s19, 64  ;;  %p123_p11 = scmp.lt.s32.totalorder %s65_s19, %s65_s19 }
  0x1d   :  { %v41_v4 = vsub.s32 0, %v40_v3  ;;  %v45_v5 = vsub.s32 1, %v40_v3  ;;  %p119_p10 = scmp.ne.s32.totalorder %s65_s19, %s118_s1  ;;  %p124_p12 = scmp.lt.s32.totalorder %s118_s1, %s118_s1 }
  0x1e   :  { %v53_v10 = vsub.s32 %v50_v6, %v40_v3 }
  0x1f   :  { %v42_v8 = vrot.slane %v37_v7, %v41_v4  ;;  %v46_v9 = vrot.slane %v37_v7, %v45_v5  ;;  %p125_p13 = por %p124_p12, %p123_p11 }
  0x21   :  { %v47_v11 = vcombine.low %v42_v8, %v46_v9  ;;  %p126_p0 = pnand %p125_p13, %p119_p10 }
  0x23   :  { %v54_v13 = vrot.slane %v47_v11, %v53_v10 }
  0x25   :  { %v56_v14 = vadd.f32 %v54_v13, %v36_v12 }
  0x27   :  { %57 = vst [vmem:[#allocation7] sm:$0xf] %v56_v14 }
  0x28   :  { %129 = shalt.err (!%p126_p0)
}
  0x29   :  { %67 = dma.vmem_to_hbm [thread:$0]  %s65_s19, 64, %s174_s2, [#allocation4]  }
  0x2a   :  { %142 = dma.done.wait [#allocation4], 64  }
  0x2b   :  { %143 = vsyncadd [#allocation4], 4294967232 }
  0x2c   :  { %71 = vsyncpa [#allocation3], 1 }
  0x2d   :  { %72 = vsyncpa [#allocation6], 1 }
  0x2e   :  { %73 = vsyncpa [#allocation4], 1 }

</bundles_post_ra>
